<compile_context>
chip_gen: v6e
topology: v6e:2x2x1
jax: 0.10.0
libtpu: 0.0.40
codegen_flags: <defaults>
</compile_context>

<pallas_src>
import functools

import jax
import jax.numpy as jnp
from jax.experimental import pallas as pl
from jax.experimental.pallas import tpu as pltpu

ALPHA = 1.0
GAMMA = 2.0

LANE = 128       # vreg lane width (last dim)
SUBLANE = 8      # f32 sublane granule (second-to-last dim)

# Per-stream, per-pipeline-buffer tile budget. 4 MiB -> 8192 f32 rows /
# 16384 bf16 rows of 128 lanes.  sum path: 2 streams x 2 buffers = 16 MiB;
# 'none' path: 3 streams x 2 buffers = 24 MiB; both fit the explicit 40 MiB
# scoped-VMEM limit below (v7x has 64 MiB physical per TC, v5e/v6e have 128).
TILE_BYTES_PER_BUFFER = 4 * 1024 * 1024
VMEM_LIMIT_BYTES = 40 * 1024 * 1024


def _cdiv(a, b):
    return -(-a // b)


def _num_tensorcores():
    """Best-effort TensorCore-per-chip count (2 on v7x). Defaults to 1."""
    try:
        info = pltpu.get_tpu_info()
    except Exception:
        return 1
    for name in ("num_cores", "num_tensorcores", "tensor_cores_per_chip",
                 "cores_per_chip", "core_count"):
        v = getattr(info, name, None)
        if isinstance(v, int) and 1 <= v <= 8:
            return v
    return 1


def _focal_elementwise(x, t, *, gamma, hard_labels):
    """Stable BCE-with-logits + focal weighting in f32 (alpha applied by caller)."""
    x = x.astype(jnp.float32)
    t = t.astype(jnp.float32)
    e = jnp.exp(-jnp.abs(x))                               # EUP #1
    # Numerically stable BCE with logits (matches PyTorch):
    #   bce = max(x, 0) - x * t + log1p(exp(-|x|))
    bce = jnp.maximum(x, 0.0) - x * t + jnp.log1p(e)       # EUP #2 (log1p)
    if hard_labels:
        # Exact for t in {0, 1}: pt = sigmoid(x) if t == 1 else sigmoid(-x),
        # reusing e = exp(-|x|).  Replaces a full exp with a cheap EUP vrcp.
        num = jnp.where(x * (2.0 * t - 1.0) >= 0.0, 1.0, e)
        pt = num * pl.reciprocal(1.0 + e, approx=True)
    else:
        pt = jnp.exp(-bce)                                 # EUP #3 (exact path)
    one_minus_pt = 1.0 - pt
    if gamma == 2.0:
        w = one_minus_pt * one_minus_pt      # default: one VPU mul, no pow
    elif gamma == 1.0:
        w = one_minus_pt
    elif gamma == 0.0:
        w = jnp.ones_like(one_minus_pt)
    else:
        w = jnp.power(jnp.maximum(one_minus_pt, 0.0), jnp.float32(gamma))
    return w * bce


def _fold_rows(x):
    """Sum a (R, 128) f32 tile over rows -> (1, 128) with VPU-only adds."""
    r = x.shape[0]
    if r % (4 * SUBLANE) == 0:
        # 4-vreg-wide accumulator: 4 independent add chains instead of one
        # serial chain; the small cross-sublane reduce happens once per tile.
        y = jnp.sum(x.reshape(r // (4 * SUBLANE), 4 * SUBLANE, LANE), axis=0)
        y = jnp.sum(y, axis=0)
    else:
        y = jnp.sum(x, axis=0)
    return y.reshape(1, LANE)


def _focal_sum_kernel(x_ref, t_ref, out_ref, *, gamma, hard_labels,
                      last_block, tail_valid, has_extra_blocks):
    """Streamed sum with a per-partition (1, 128) vector accumulator."""
    tile_rows = x_ref.shape[0]
    p = pl.program_id(0)
    k = pl.program_id(1)
    b = p * pl.num_programs(1) + k

    @pl.when(k == 0)
    def _():
        out_ref[...] = jnp.zeros_like(out_ref)

    def accumulate(mask_tail):
        focal = _focal_elementwise(x_ref[...], t_ref[...],
                                   gamma=gamma, hard_labels=hard_labels)
        if mask_tail:
            # Trailing partial block: zero OOB rows / lane padding before fold.
            row = jax.lax.broadcasted_iota(jnp.int32, (tile_rows, LANE), 0)
            col = jax.lax.broadcasted_iota(jnp.int32, (tile_rows, LANE), 1)
            focal = jnp.where(row * LANE + col < tail_valid, focal, 0.0)
        out_ref[...] += _fold_rows(focal).reshape(1, 1, LANE)

    tail_full = (tail_valid == tile_rows * LANE)
    if tail_full and not has_extra_blocks:
        accumulate(mask_tail=False)          # every grid step is a full tile
    else:
        @pl.when(b < last_block)             # interior blocks: no mask needed
        def _():
            accumulate(mask_tail=False)

        @pl.when(b == last_block)            # trailing block: mask the tail
        def _():
            accumulate(mask_tail=not tail_full)
        # b > last_block: clamped duplicate of the last block -> skipped.


def _focal_none_kernel(x_ref, t_ref, o_ref, *, alpha, gamma, hard_labels):
    focal = _focal_elementwise(x_ref[...], t_ref[...],
                               gamma=gamma, hard_labels=hard_labels)
    if alpha != 1.0:
        focal = jnp.float32(alpha) * focal
    o_ref[...] = focal.astype(o_ref.dtype)   # cast in-kernel (bf16 stays bf16)


def focal_loss(inputs, targets, alpha=ALPHA, gamma=GAMMA, reduction="mean",
               hard_labels=False, _max_tile_rows=None):
    """Focal loss matching the reference PyTorch FocalLoss.forward.

    hard_labels=True enables a pt formulation that is exact for {0,1} targets
    and saves one exp/element (uses an approximate EUP reciprocal).  Leave it
    False for soft labels / exact exp(-bce) semantics.
    _max_tile_rows is a testing knob (must be a multiple of 8).
    """
    assert inputs.shape == targets.shape
    if reduction not in ("mean", "sum", "none"):
        raise ValueError(f"unknown reduction: {reduction!r}")

    n = inputs.size
    if n == 0:
        if reduction == "none":
            return jnp.zeros(inputs.shape, inputs.dtype)
        return jnp.float32(0.0) if reduction == "sum" else jnp.float32(jnp.nan)

    rows = _cdiv(n, LANE)
    lane_pad = rows * LANE - n

    x = jnp.reshape(inputs, (-1,))
    t = jnp.reshape(targets, (-1,))
    if lane_pad:
        # Only when numel % 128 != 0: pad <128 elements so the flat array can
        # be viewed as (rows, 128).  Pad values are masked / sliced off.
        x = jnp.pad(x, (0, lane_pad))
        t = jnp.pad(t, (0, lane_pad))
    x2 = x.reshape(rows, LANE)
    t2 = t.reshape(rows, LANE)

    itemsize = max(jnp.dtype(inputs.dtype).itemsize,
                   jnp.dtype(targets.dtype).itemsize)
    budget_rows = TILE_BYTES_PER_BUFFER // (LANE * itemsize)
    budget_rows = (budget_rows // (4 * SUBLANE)) * (4 * SUBLANE)
    if _max_tile_rows is not None:
        budget_rows = min(budget_rows, _max_tile_rows)
    tile_rows = rows if rows <= budget_rows else budget_rows
    n_blocks = _cdiv(rows, tile_rows)

    if reduction == "none":
        kernel = functools.partial(_focal_none_kernel, alpha=float(alpha),
                                   gamma=float(gamma), hard_labels=hard_labels)
        out = pl.pallas_call(
            kernel,
            out_shape=jax.ShapeDtypeStruct((rows, LANE), inputs.dtype),
            grid_spec=pltpu.PrefetchScalarGridSpec(
                num_scalar_prefetch=0,
                grid=(n_blocks,),
                in_specs=[pl.BlockSpec((tile_rows, LANE), lambda i: (i, 0)),
                          pl.BlockSpec((tile_rows, LANE), lambda i: (i, 0))],
                out_specs=pl.BlockSpec((tile_rows, LANE), lambda i: (i, 0)),
            ),
            compiler_params=pltpu.CompilerParams(
                dimension_semantics=("parallel",),
                vmem_limit_bytes=VMEM_LIMIT_BYTES,
            ),
        )(x2, t2)
        if lane_pad:
            return out.reshape(-1)[:n].reshape(inputs.shape)
        return out.reshape(inputs.shape)

    # 'mean' / 'sum': streamed reduction.  Grid = (partitions, steps); each
    # partition keeps a (1, 128) accumulator resident in its output block.
    num_parts = min(_num_tensorcores(), n_blocks)
    k_steps = _cdiv(n_blocks, num_parts)
    last_block = n_blocks - 1
    tail_valid = n - last_block * tile_rows * LANE
    has_extra = num_parts * k_steps > n_blocks

    def in_map(p, k):
        b = p * k_steps + k
        if has_extra:
            # Clamp fully-out-of-range steps onto the last block; the kernel
            # skips them (b > last_block), so they contribute nothing.
            b = jnp.minimum(b, last_block)
        return (b, 0)

    kernel = functools.partial(
        _focal_sum_kernel, gamma=float(gamma), hard_labels=hard_labels,
        last_block=last_block, tail_valid=tail_valid, has_extra_blocks=has_extra)

    partials = pl.pallas_call(
        kernel,
        out_shape=jax.ShapeDtypeStruct((num_parts, 1, LANE), jnp.float32),
        grid_spec=pltpu.PrefetchScalarGridSpec(
            num_scalar_prefetch=0,
            grid=(num_parts, k_steps),
            in_specs=[pl.BlockSpec((tile_rows, LANE), in_map),
                      pl.BlockSpec((tile_rows, LANE), in_map)],
            out_specs=pl.BlockSpec((1, 1, LANE), lambda p, k: (p, 0, 0)),
        ),
        compiler_params=pltpu.CompilerParams(
            # Partition axis shards across TensorCores (v7x); the reduction
            # axis stays 'arbitrary' so the output-block accumulator is carried.
            # TODO(synk): verify in xprof that both v7x TCs engage; if not,
            # switch the leading axis to pltpu.CORE_PARALLEL.
            dimension_semantics=("parallel", "arbitrary"),
            vmem_limit_bytes=VMEM_LIMIT_BYTES,
        ),
    )(x2, t2)

    total = jnp.sum(partials) * jnp.float32(alpha)   # tiny (P,1,128) reduce in XLA
    if reduction == "mean":
        return total / jnp.float32(n)
    return total


def _ref_focal_none(inputs, targets, alpha=ALPHA, gamma=GAMMA):
    x = inputs.astype(jnp.float32)
    t = targets.astype(jnp.float32)
    bce = jnp.maximum(x, 0.0) - x * t + jnp.log1p(jnp.exp(-jnp.abs(x)))
    pt = jnp.exp(-bce)
    return alpha * (1.0 - pt) ** gamma * bce


if __name__ == "__main__":
    key = jax.random.PRNGKey(0)
    k1, k2, k3, k4 = jax.random.split(key, 4)

    # NCHW-like shape (2, 4, 16, 16): logits + binary targets.
    shape = (2, 4, 16, 16)
    x = jax.random.normal(k1, shape, dtype=jnp.float32)
    t = (jax.random.uniform(k2, shape) > 0.5).astype(jnp.float32)

    ref_none = _ref_focal_none(x, t)
    ref_mean = jnp.mean(ref_none)
    ref_sum = jnp.sum(ref_none)

    out_mean = jax.block_until_ready(focal_loss(x, t, reduction="mean"))
    assert jnp.allclose(out_mean, ref_mean, rtol=1e-5, atol=1e-6), (out_mean, ref_mean)

    out_sum = jax.block_until_ready(focal_loss(x, t, reduction="sum"))
    assert jnp.allclose(out_sum, ref_sum, rtol=1e-5, atol=1e-4), (out_sum, ref_sum)

    out_none = jax.block_until_ready(focal_loss(x, t, reduction="none"))
    assert out_none.shape == shape and out_none.dtype == x.dtype
    assert jnp.allclose(out_none, ref_none, rtol=1e-5, atol=1e-6)

    # Hard-label fast path (one fewer exp/element; approximate EUP reciprocal).
    out_hard = jax.block_until_ready(focal_loss(x, t, reduction="mean",
                                                hard_labels=True))
    assert jnp.allclose(out_hard, ref_mean, rtol=2e-2, atol=1e-3), (out_hard, ref_mean)

    # Ragged size (numel % 128 != 0) + forced multi-block tiling to exercise
    # the trailing-block mask and the carried accumulator.
    shape2 = (5, 3, 7, 11)
    x2 = jax.random.normal(k3, shape2, dtype=jnp.float32)
    t2 = (jax.random.uniform(k4, shape2) > 0.5).astype(jnp.float32)
    ref2 = _ref_focal_none(x2, t2)
    out2_sum = jax.block_until_ready(
        focal_loss(x2, t2, reduction="sum", _max_tile_rows=8))
    assert jnp.allclose(out2_sum, jnp.sum(ref2), rtol=1e-5, atol=1e-4), (
        out2_sum, jnp.sum(ref2))
    out2_none = jax.block_until_ready(
        focal_loss(x2, t2, reduction="none", _max_tile_rows=8))
    assert jnp.allclose(out2_none, ref2, rtol=1e-5, atol=1e-6)

    # bf16 inputs: math stays in f32 inside the kernel.
    xb = x.astype(jnp.bfloat16)
    tb = t.astype(jnp.bfloat16)
    ref_b = jnp.mean(_ref_focal_none(xb, tb))
    out_b = jax.block_until_ready(focal_loss(xb, tb, reduction="mean"))
    assert jnp.allclose(out_b, ref_b, rtol=1e-4, atol=1e-5), (out_b, ref_b)

    print("KERNEL_OK")
</pallas_src>

<mosaic_0001>
module attributes {stable_mosaic.version = 11 : i64} {
  func.func @_focal_sum_kernel(%arg0: i32, %arg1: i32, %arg2: memref<16x128xf32, #tpu.memory_space<vmem>>, %arg3: memref<16x128xf32, #tpu.memory_space<vmem>>, %arg4: memref<1x1x128xf32, #tpu.memory_space<vmem>>) attributes {dimension_semantics = [#tpu.dimension_semantics<parallel>, #tpu.dimension_semantics<arbitrary>], iteration_bounds = array<i64: 1, 1>, scalar_prefetch = 0 : i64, scratch_operands = 0 : i64, tpu.core_type = #tpu.core_type<tc>, window_params = [{transform_indices = @transform_0, window_bounds = array<i64: 16, 128>}, {transform_indices = @transform_1, window_bounds = array<i64: 16, 128>}, {transform_indices = @transform_2, window_bounds = array<i64: 1, 1, 128>}]} {
    %c0_i32 = arith.constant 0 : i32
    %0 = arith.cmpi eq, %arg1, %c0_i32 : i32
    %1 = arith.extui %0 : i1 to i32
    %c0_i32_0 = arith.constant 0 : i32
    %2 = arith.cmpi ne, %1, %c0_i32_0 : i32
    scf.if %2 {
      %cst_14 = arith.constant 0.000000e+00 : f32
      %28 = vector.broadcast %cst_14 : f32 to vector<1x1x128xf32>
      %c0_15 = arith.constant 0 : index
      %c0_16 = arith.constant 0 : index
      %c0_17 = arith.constant 0 : index
      %29 = vector.load %arg4[%c0_15, %c0_16, %c0_17] : memref<1x1x128xf32, #tpu.memory_space<vmem>>, vector<1x1x128xf32>
      tpu.vector_store %arg4[%c0_15, %c0_16, %c0_17], %28 {strides = array<i32>} : memref<1x1x128xf32, #tpu.memory_space<vmem>>, vector<1x1x128xf32>,
    } else {
    }
    %c0 = arith.constant 0 : index
    %c0_1 = arith.constant 0 : index
    %3 = vector.load %arg2[%c0, %c0_1] : memref<16x128xf32, #tpu.memory_space<vmem>>, vector<16x128xf32>
    %c0_2 = arith.constant 0 : index
    %c0_3 = arith.constant 0 : index
    %4 = vector.load %arg3[%c0_2, %c0_3] : memref<16x128xf32, #tpu.memory_space<vmem>>, vector<16x128xf32>
    %5 = math.absf %3 : vector<16x128xf32>
    %cst = arith.constant 0.000000e+00 : f32
    %6 = vector.broadcast %cst : f32 to vector<16x128xf32>
    %7 = arith.subf %6, %5 : vector<16x128xf32>
    %8 = math.exp %7 : vector<16x128xf32>
    %cst_4 = arith.constant 0.000000e+00 : f32
    %9 = vector.broadcast %cst_4 : f32 to vector<16x128xf32>
    %10 = arith.maximumf %3, %9 : vector<16x128xf32>
    %11 = arith.mulf %3, %4 : vector<16x128xf32>
    %12 = arith.subf %10, %11 : vector<16x128xf32>
    %13 = math.log1p %8 : vector<16x128xf32>
    %14 = arith.addf %12, %13 : vector<16x128xf32>
    %cst_5 = arith.constant 0.000000e+00 : f32
    %15 = vector.broadcast %cst_5 : f32 to vector<16x128xf32>
    %16 = arith.subf %15, %14 : vector<16x128xf32>
    %17 = math.exp %16 : vector<16x128xf32>
    %cst_6 = arith.constant 1.000000e+00 : f32
    %18 = vector.broadcast %cst_6 : f32 to vector<16x128xf32>
    %19 = arith.subf %18, %17 : vector<16x128xf32>
    %20 = arith.mulf %19, %19 : vector<16x128xf32>
    %21 = arith.mulf %20, %14 : vector<16x128xf32>
    %c0_7 = arith.constant 0 : index
    %c0_8 = arith.constant 0 : index
    %c0_9 = arith.constant 0 : index
    %22 = vector.load %arg4[%c0_7, %c0_8, %c0_9] : memref<1x1x128xf32, #tpu.memory_space<vmem>>, vector<1x1x128xf32>
    %cst_10 = arith.constant dense<0.000000e+00> : vector<128xf32>
    %23 = vector.multi_reduction <add>, %21, %cst_10 [0] : vector<16x128xf32> to vector<128xf32>
    %24 = vector.shape_cast %23 : vector<128xf32> to vector<1x128xf32>
    %25 = vector.shape_cast %24 : vector<1x128xf32> to vector<1x1x128xf32>
    %26 = arith.addf %22, %25 : vector<1x1x128xf32>
    %c0_11 = arith.constant 0 : index
    %c0_12 = arith.constant 0 : index
    %c0_13 = arith.constant 0 : index
    %27 = vector.load %arg4[%c0_11, %c0_12, %c0_13] : memref<1x1x128xf32, #tpu.memory_space<vmem>>, vector<1x1x128xf32>
    tpu.vector_store %arg4[%c0_11, %c0_12, %c0_13], %26 {strides = array<i32>} : memref<1x1x128xf32, #tpu.memory_space<vmem>>, vector<1x1x128xf32>,
    return
  }
  func.func @transform_0(%arg0: i32, %arg1: i32) -> (i32, i32) {
    %c1_i32 = arith.constant 1 : i32
    %0 = arith.muli %arg0, %c1_i32 : i32
    %1 = arith.addi %0, %arg1 : i32
    %c0_i32 = arith.constant 0 : i32
    %c0_i32_0 = arith.constant 0 : i32
    return %1, %c0_i32 : i32, i32
  }
  func.func @transform_1(%arg0: i32, %arg1: i32) -> (i32, i32) {
    %c1_i32 = arith.constant 1 : i32
    %0 = arith.muli %arg0, %c1_i32 : i32
    %1 = arith.addi %0, %arg1 : i32
    %c0_i32 = arith.constant 0 : i32
    %c0_i32_0 = arith.constant 0 : i32
    return %1, %c0_i32 : i32, i32
  }
  func.func @transform_2(%arg0: i32, %arg1: i32) -> (i32, i32, i32) {
    %c0_i32 = arith.constant 0 : i32
    %c0_i32_0 = arith.constant 0 : i32
    %c0_i32_1 = arith.constant 0 : i32
    return %arg0, %c0_i32, %c0_i32_0 : i32, i32, i32
  }
}

</mosaic_0001>

<bundles_post_ra>
// kernel: tpu_custom_call.1
= control target key start
LH: loop header
LB: loop body
LE: loop exit
PB: predicated region body
PF: predicated region fallthrough
CT: control target
= control target key end

     0   :  { %7 = vsyncpa [#allocation3], 0  ;;  %s247_s0 = inlined_call_operand.hbm [shape: f32[16,128], index: 0, kind: input, shape index: {}]   ;;  %s248_s1 = inlined_call_operand.hbm [shape: f32[16,128], index: 1, kind: input, shape index: {}]   ;;  %s249_s2 = inlined_call_operand.hbm [shape: f32[1,1,128], index: 2, kind: output, shape index: {}]  }
   0x1   :  { %8 = vsyncpa [#allocation6], 0 }
   0x2   :  { %9 = vsyncpa [#allocation4], 0  ;;  %s217_s9 = smov [#allocation2]  }
   0x3   :  { %s19_s10 = sshll.u32 %s217_s9, 4  ;;  %s20_s10 = int_to_ptr.vmem [resolvable:$true] %s19_s10 }
   0x4   :  { %s159_s11 = scalar_lea.vmem %s20_s10, 256  ;;  %p164_p1 = scmp.lt.s32.totalorder %s20_s10, %s20_s10 }
   0x5   :  { %p160_p0 = scmp.ne.s32.totalorder %s20_s10, %s159_s11  ;;  %p165_p2 = scmp.lt.s32.totalorder %s159_s11, %s159_s11 }
   0x7   :  { %p166_p3 = por %p165_p2, %p164_p1 }
   0x9   :  { %p167_p4 = pnand %p166_p3, %p160_p0 }
   0xb   :  { %170 = shalt.err (!%p167_p4)
}
   0xc   :  { %s218_s12 = smov 128   ;;  %s219_s13 = smov 8  }
   0xd   :  { %25 = dma.hbm_to_vmem [thread:$0]  %s247_s0, 256, %s20_s10, [#allocation3], %s218_s12, %s218_s12, %s219_s13  }
   0xe   :  { %s220_s16 = smov [#allocation5]  }
   0xf   :  { %s35_s17 = sshll.u32 %s220_s16, 4  ;;  %s36_s17 = int_to_ptr.vmem [resolvable:$true] %s35_s17 }
  0x10   :  { %s179_s18 = scalar_lea.vmem %s36_s17, 256  ;;  %p184_p6 = scmp.lt.s32.totalorder %s36_s17, %s36_s17 }
  0x11   :  { %p180_p5 = scmp.ne.s32.totalorder %s36_s17, %s179_s18  ;;  %p185_p7 = scmp.lt.s32.totalorder %s179_s18, %s179_s18 }
  0x13   :  { %p186_p8 = por %p185_p7, %p184_p6 }
  0x15   :  { %p187_p9 = pnand %p186_p8, %p180_p5 }
  0x17   :  { %190 = shalt.err (!%p187_p9)
}
  0x18   :  { %41 = dma.hbm_to_vmem [thread:$0]  %s248_s1, 256, %s36_s17, [#allocation6], %s218_s12, %s218_s12, %s219_s13  }
  0x19   :  { %211 = dma.done.wait [#allocation3], 256  }
  0x1a   :  { %212 = vsyncadd [#allocation3], 4294967040 }
  0x1b   :  { %213 = dma.done.wait [#allocation6], 256  }
  0x1c   :  { %214 = vsyncadd [#allocation6], 4294967040  ;;  %v221_v0 = vmov 0.0   ;;  %v57_v1 = vld [vmem:[#allocation2] sm:$0xff]  ;;  %v58_v2 = vld [vmem:[#allocation2 + $0x8] sm:$0xff]  ;;  %s222_s0 = smov [#allocation7]  }
  0x1d   :  { %56 = vst [vmem:[#allocation7] sm:$0x1] %v221_v0  ;;  %v61_v3 = vand.u32 2147483647, %v57_v1  ;;  %v62_v4 = vand.u32 2147483647, %v58_v2 }
  0x1e   :  { %v59_v15 = vld [vmem:[#allocation5] sm:$0xff]  ;;  %v60_v16 = vld [vmem:[#allocation5 + $0x8] sm:$0xff]  ;;  %v69_v18 = vmax.f32 %v57_v1, 0.0  ;;  %v70_v22 = vmax.f32 %v58_v2, 0.0  ;;  %s123_s1 = sshll.u32 %s222_s0, 4  ;;  %s124_s1 = int_to_ptr.vmem [resolvable:$true] %s123_s1 }
  0x1f   :  { %v63_v5 = vsub.f32 0.0, %v61_v3  ;;  %v64_v6 = vsub.f32 0.0, %v62_v4  ;;  %v71_v19 = vmul.f32 %v59_v15, %v57_v1  ;;  %v72_v23 = vmul.f32 %v60_v16, %v58_v2  ;;  %s191_s21 = scalar_lea.vmem %s124_s1, 16  ;;  %s195_s22 = scalar_lea.vmem %s124_s1, 32 }
  0x20   :  { %p192_p10 = scmp.ne.s32.totalorder %s124_s1, %s191_s21  ;;  %p196_p11 = scmp.lt.s32.totalorder %s124_s1, %s124_s1 }
  0x21   :  { %v65_v7 = vmul.f32 1.442695, %v63_v5  ;;  %v67_v8 = vmul.f32 1.442695, %v64_v6  ;;  %v73_v27 = vsub.f32 %v69_v18, %v71_v19  ;;  %v74_v30 = vsub.f32 %v70_v22, %v72_v23  ;;  %p197_p12 = scmp.lt.s32.totalorder %s195_s22, %s191_s21 }
  0x23   :  { %139 = vpow2.f32 %v65_v7  ;;  %p198_p13 = por %p197_p12, %p196_p11 }
  0x24   :  { %141 = vpow2.f32 %v67_v8  ;;  %v107_v55 = vld [vmem:[#allocation7] sm:$0x1] }
  0x25   :  { %p199_p0 = pnand %p198_p13, %p192_p10 }
  0x30   :  { %v140_v9 = vpop.eup %139 }
  0x31   :  { %v142_v10 = vpop.eup %141  ;;  %v75_v11 = vadd.f32 1.0, %v140_v9  ;;  %v78_v13 = vmul.f32 -0.5, %v140_v9  ;;  %v81_v20 = vand.u32 2147483647, %v140_v9 }
  0x32   :  { %v84_v12 = vadd.f32 1.0, %v142_v10  ;;  %v87_v14 = vmul.f32 -0.5, %v142_v10  ;;  %v90_v24 = vand.u32 2147483647, %v142_v10 }
  0x33   :  { %143 = vlog2.f32 %v75_v11  ;;  %v79_v17 = vadd.f32 1.0, %v78_v13  ;;  %vm82_vm0 = vcmp.lt.f32.partialorder %v81_v20, 0.0004427343 }
  0x34   :  { %145 = vlog2.f32 %v84_v12  ;;  %v88_v21 = vadd.f32 1.0, %v87_v14  ;;  %vm91_vm1 = vcmp.lt.f32.partialorder %v90_v24, 0.0004427343 }
  0x35   :  { %v80_v25 = vmul.f32 %v140_v9, %v79_v17 }
  0x36   :  { %v89_v28 = vmul.f32 %v142_v10, %v88_v21 }
  0x40   :  { %v144_v26 = vpop.eup %143 }
  0x41   :  { %v146_v29 = vpop.eup %145  ;;  %v77_v31 = vmul.f32 0.6931472, %v144_v26 }
  0x42   :  { %v86_v32 = vmul.f32 0.6931472, %v146_v29 }
  0x43   :  { %v83_v33 = vsel %vm82_vm0, %v80_v25, %v77_v31 }
  0x44   :  { %v92_v34 = vsel %vm91_vm1, %v89_v28, %v86_v32  ;;  %v93_v35 = vadd.f32 %v83_v33, %v73_v27 }
  0x45   :  { %v94_v36 = vadd.f32 %v92_v34, %v74_v30 }
  0x46   :  { %v95_v37 = vsub.f32 0.0, %v93_v35 }
  0x47   :  { %v96_v38 = vsub.f32 0.0, %v94_v36 }
  0x48   :  { %v97_v39 = vmul.f32 1.442695, %v95_v37 }
  0x49   :  { %v99_v40 = vmul.f32 1.442695, %v96_v38 }
  0x4a   :  { %147 = vpow2.f32 %v97_v39 }
  0x4b   :  { %149 = vpow2.f32 %v99_v40 }
  0x57   :  { %v148_v41 = vpop.eup %147 }
  0x58   :  { %v150_v42 = vpop.eup %149  ;;  %v101_v43 = vsub.f32 1.0, %v148_v41 }
  0x59   :  { %v102_v44 = vsub.f32 1.0, %v150_v42 }
  0x5a   :  { %v103_v45 = vmul.f32 %v101_v43, %v101_v43 }
  0x5b   :  { %v104_v46 = vmul.f32 %v102_v44, %v102_v44 }
  0x5c   :  { %v105_v47 = vmul.f32 %v103_v45, %v93_v35 }
  0x5d   :  { %v106_v48 = vmul.f32 %v104_v46, %v94_v36 }
  0x5f   :  { %v108_v49 = vadd.f32 %v106_v48, %v105_v47 }
  0x61   :  { %v109_v50 = vrot.slane %v108_v49, 4 }
  0x63   :  { %v110_v51 = vadd.f32 %v109_v50, %v108_v49 }
  0x65   :  { %v111_v52 = vrot.slane %v110_v51, 2 }
  0x67   :  { %v112_v53 = vadd.f32 %v111_v52, %v110_v51 }
  0x69   :  { %v113_v54 = vrot.slane %v112_v53, 1 }
  0x6b   :  { %v114_v56 = vadd.f32 %v113_v54, %v112_v53 }
  0x6d   :  { %v115_v57 = vadd.f32 %v114_v56, %v107_v55 }
  0x6f   :  { %116 = vst [vmem:[#allocation7] sm:$0x1] %v115_v57 }
  0x70   :  { %202 = shalt.err (!%p199_p0)
}
  0x71   :  { %126 = dma.vmem_to_hbm [thread:$0]  %s124_s1, 16, %s249_s2, [#allocation4]  }
  0x72   :  { %215 = dma.done.wait [#allocation4], 16  }
  0x73   :  { %216 = vsyncadd [#allocation4], 4294967280 }
  0x74   :  { %130 = vsyncpa [#allocation3], 1 }
  0x75   :  { %131 = vsyncpa [#allocation6], 1 }
  0x76   :  { %132 = vsyncpa [#allocation4], 1 }

</bundles_post_ra>
